<compile_context>
chip_gen: v6e
topology: v6e:2x2x1
jax: 0.10.0
libtpu: 0.0.40
codegen_flags: <defaults>
</compile_context>

<pallas_src>
import jax
import jax.numpy as jnp
from jax.experimental import pallas as pl
from jax.experimental.pallas import tpu as pltpu

LANE = 128       # lane width (last-dim tiling)
ROW_ALIGN = 32   # int8 sublane packing for the adjacency row axis


def _round_up(v: int, m: int) -> int:
    return ((v + m - 1) // m) * m


def _cdiv(a: int, b: int) -> int:
    return (a + b - 1) // b


def _pick_tiles(n: int, tm_target: int, tk_target: int):
    """Row/contraction tile sizes with no O(N^2) padding inflation."""
    # Rows: >=2 parallel tiles when possible (keeps both v7x TCs busy),
    # bounded by tm_target; tm is a multiple of 32 (int8 sublane packing).
    grid_rows = max(_cdiv(n, tm_target), 2 if n >= 2 * ROW_ALIGN else 1)
    tm = _round_up(_cdiv(n, grid_rows), ROW_ALIGN)
    row_pad = grid_rows * tm
    # Columns (contraction axis): pad only to the 128-lane minimum, then pick
    # the largest tk <= tk_target that divides it exactly.
    col_pad = _round_up(n, LANE)
    blocks = col_pad // LANE
    d = 1
    for cand in range(min(blocks, max(tk_target // LANE, 1)), 0, -1):
        if blocks % cand == 0:
            d = cand
            break
    tk = d * LANE
    grid_k = col_pad // tk
    return tm, grid_rows, row_pad, tk, grid_k, col_pad


def prepare_adjacency(adj, *, tm_target: int = 512, tk_target: int = 2048,
                      binary_adj: bool = True):
    """One-time pad + cast of the O(N^2) adjacency.

    Cache / hoist this across forward calls: adj is static per graph and the
    pad/cast pass costs about as much HBM traffic as the kernel's adj read.
    binary_adj=True requires a 0/1 adjacency (exact in int8); pass False for
    weighted adjacency (streamed as bf16, ~3 decimal digits of precision).
    """
    n = adj.shape[0]
    tm, _, row_pad, tk, _, col_pad = _pick_tiles(n, tm_target, tk_target)
    dt = jnp.int8 if binary_adj else jnp.bfloat16
    adj_p = jnp.zeros((row_pad, col_pad), dt).at[:n, :n].set(adj.astype(dt))
    return adj_p, tm, tk


def _commdet_kernel(adj_ref, xw_ref, bg_ref, w1_ref, b1_ref, w2_ref, b2_ref,
                    out_ref, acc_ref):
    # adj_ref: [TM, TK] int8/bf16 (streamed), xw_ref: [TK, Gp] bf16 (streamed)
    # weights bf16 / biases f32 (resident), out_ref: [TM, Kp] f32 (lane-dense)
    # acc_ref: [TM, Gp] f32 VMEM scratch (persists across the contraction axis)
    kk = pl.program_id(1)

    @pl.when(kk == 0)
    def _():
        acc_ref[...] = jnp.zeros_like(acc_ref)

    # int8 0/1 -> bf16 on the VPU (free: kernel is HBM-bound), then the
    # MXU-native bf16 x bf16 -> f32 accumulate path.
    adj = adj_ref[...].astype(jnp.bfloat16)
    acc_ref[...] += jnp.dot(adj, xw_ref[...], preferred_element_type=jnp.float32)

    @pl.when(kk == pl.num_programs(1) - 1)
    def _():
        # GNN nonlinearity + 2-layer MLP epilogue on the finished row tile.
        z = jnp.maximum(acc_ref[...] + bg_ref[...], 0.0).astype(jnp.bfloat16)
        h = jnp.dot(z, w1_ref[...], preferred_element_type=jnp.float32)
        h = jnp.maximum(h + b1_ref[...], 0.0).astype(jnp.bfloat16)
        logits = jnp.dot(h, w2_ref[...], preferred_element_type=jnp.float32)
        logits = logits + b2_ref[...]          # padded cluster cols carry -1e30 (f32)

        # Softmax over the (padded) cluster axis, all f32.
        m = jnp.max(logits, axis=-1, keepdims=True)
        e = jnp.exp(logits - m)                # padded cols underflow to exactly 0
        denom = jnp.sum(e, axis=-1, keepdims=True)
        out_ref[...] = e / denom               # exact divide -> rows sum to 1


def comm_det_gnn(x, adj, params, hard_assignment: bool = False, *,
                 tm_target: int = 512, tk_target: int = 2048,
                 binary_adj: bool = True, adj_prepped=None):
    """x: [N, F_in] f32, adj: [N, N] (0/1). Returns assignments [N, K].

    adj_prepped: optional result of prepare_adjacency() to amortize the
    adjacency pad/cast across calls (adj is static per graph).
    """
    wg, bg, w1, b1, w2, b2 = params
    n, _ = x.shape
    gnn_out = wg.shape[1]
    hidden = w1.shape[1]
    k = w2.shape[1]

    if adj_prepped is None:
        adj_prepped = prepare_adjacency(adj, tm_target=tm_target,
                                        tk_target=tk_target,
                                        binary_adj=binary_adj)
    adj_p, tm, tk = adj_prepped
    row_pad, col_pad = adj_p.shape
    grid_rows = row_pad // tm
    grid_k = col_pad // tk

    g_pad = _round_up(gnn_out, LANE)
    h_pad = _round_up(hidden, LANE)
    kp = _round_up(k, LANE)
    NEG = jnp.float32(-1e30)

    # Host-side preprocessing (O(N*G), small next to the O(N^2) adj stream):
    # fold Wg into x so the kernel only does adj @ xw for the GNN layer.
    xw = x @ wg                                                    # f32 matmul
    xw_p = jnp.zeros((col_pad, g_pad), jnp.bfloat16).at[:n, :gnn_out].set(
        xw.astype(jnp.bfloat16))
    bg_p = jnp.zeros((1, g_pad), jnp.float32).at[:, :gnn_out].set(bg.reshape(1, -1))
    w1_p = jnp.zeros((g_pad, h_pad), jnp.bfloat16).at[:gnn_out, :hidden].set(
        w1.astype(jnp.bfloat16))
    b1_p = jnp.zeros((1, h_pad), jnp.float32).at[:, :hidden].set(b1.reshape(1, -1))
    w2_p = jnp.zeros((h_pad, kp), jnp.bfloat16).at[:hidden, :k].set(
        w2.astype(jnp.bfloat16))
    b2_p = jnp.full((1, kp), NEG, jnp.float32).at[:, :k].set(b2.reshape(1, -1))

    # VMEM budget (bounded, independent of N thanks to the contraction tiling).
    nbytes = lambda a: a.size * a.dtype.itemsize
    resident = (nbytes(bg_p) + nbytes(w1_p) + nbytes(b1_p)
                + nbytes(w2_p) + nbytes(b2_p))
    vmem_bytes = (2 * tm * tk * adj_p.dtype.itemsize   # adj tile, double-buffered
                  + 2 * tk * g_pad * 2                 # xw tile (bf16), double-buffered
                  + 2 * tm * kp * 4                    # out tile (f32), double-buffered
                  + tm * g_pad * 4                     # f32 accumulator scratch
                  + 2 * resident)                      # residents (default double-buffer)
    try:
        # ~75% of physical per-core VMEM (48 MiB on v7x, 96 MiB on v5e/v6e).
        vmem_cap = int(pltpu.get_tpu_info().vmem_capacity_bytes * 3 // 4)
    except Exception:
        vmem_cap = 48 << 20                            # safe on all generations
    vmem_limit = int(min(max(vmem_bytes + (4 << 20), 32 << 20), vmem_cap))

    # Advisory cost estimate for XLA's scheduler.
    flops = (2 * row_pad * col_pad * g_pad
             + 2 * row_pad * g_pad * h_pad
             + 2 * row_pad * h_pad * kp)
    bytes_accessed = (nbytes(adj_p) + nbytes(xw_p) + resident + row_pad * kp * 4)
    cost = pl.CostEstimate(flops=flops, transcendentals=row_pad * kp,
                           bytes_accessed=bytes_accessed)

    s_full = pl.pallas_call(
        _commdet_kernel,
        out_shape=jax.ShapeDtypeStruct((row_pad, kp), jnp.float32),
        grid_spec=pltpu.PrefetchScalarGridSpec(
            num_scalar_prefetch=0,
            grid=(grid_rows, grid_k),
            in_specs=[
                pl.BlockSpec((tm, tk), lambda i, kk: (i, kk)),      # adj (int8/bf16, streamed)
                pl.BlockSpec((tk, g_pad), lambda i, kk: (kk, 0)),   # xw = x @ Wg (bf16, streamed)
                pl.BlockSpec((1, g_pad), lambda i, kk: (0, 0)),     # bg (f32, resident)
                pl.BlockSpec((g_pad, h_pad), lambda i, kk: (0, 0)),  # W1 (bf16, resident)
                pl.BlockSpec((1, h_pad), lambda i, kk: (0, 0)),     # b1
                pl.BlockSpec((h_pad, kp), lambda i, kk: (0, 0)),    # W2
                pl.BlockSpec((1, kp), lambda i, kk: (0, 0)),        # b2 (-1e30 pad cols, f32)
            ],
            out_specs=pl.BlockSpec((tm, kp), lambda i, kk: (i, 0)),  # lane-dense output
            scratch_shapes=[pltpu.VMEM((tm, g_pad), jnp.float32)],
        ),
        compiler_params=pltpu.CompilerParams(
            dimension_semantics=("parallel", "arbitrary"),
            vmem_limit_bytes=vmem_limit),
        cost_estimate=cost,
    )(adj_p, xw_p, bg_p, w1_p, b1_p, w2_p, b2_p)

    s = s_full[:n, :k]
    if hard_assignment:
        # Glue (not the hot path): one-hot of argmax over clusters.
        idx = jnp.argmax(s, axis=-1)
        s = jax.nn.one_hot(idx, k, dtype=s.dtype)
    return s


def init_params(key, f_in, gnn_out, hidden, num_clusters):
    k1, k2, k3 = jax.random.split(key, 3)
    wg = jax.random.normal(k1, (f_in, gnn_out), jnp.float32) * 0.1
    bg = jnp.zeros((1, gnn_out), jnp.float32)
    w1 = jax.random.normal(k2, (gnn_out, hidden), jnp.float32) * 0.1
    b1 = jnp.zeros((1, hidden), jnp.float32)
    w2 = jax.random.normal(k3, (hidden, num_clusters), jnp.float32) * 0.1
    b2 = jnp.zeros((1, num_clusters), jnp.float32)
    return wg, bg, w1, b1, w2, b2


if __name__ == "__main__":
    N, F_IN, GNN_OUT, HIDDEN, K = 16, 8, 32, 32, 4

    key = jax.random.PRNGKey(0)
    kx, ka, kp = jax.random.split(key, 3)

    x = jax.random.normal(kx, (N, F_IN), jnp.float32)
    # Symmetric 0/1 adjacency with self loops (deterministic).
    a = (jax.random.uniform(ka, (N, N)) > 0.7).astype(jnp.float32)
    adj = jnp.minimum(a + a.T + jnp.eye(N, dtype=jnp.float32), 1.0)

    params = init_params(kp, F_IN, GNN_OUT, HIDDEN, K)

    # Pad/cast the adjacency ONCE and reuse it for every forward call.
    adj_prepped = prepare_adjacency(adj, binary_adj=True)

    s = comm_det_gnn(x, adj, params, hard_assignment=False,
                     adj_prepped=adj_prepped)
    s = jax.block_until_ready(s)

    # Reference in plain f32 JAX. Kernel streams adj/xw/weights in bf16
    # (f32 accumulation), so tolerance is loosened accordingly; the softmax
    # divide is exact, so row sums are checked tightly.
    wg, bg, w1, b1, w2, b2 = params
    z_ref = jnp.maximum(adj @ x @ wg + bg, 0.0)
    h_ref = jnp.maximum(z_ref @ w1 + b1, 0.0)
    s_ref = jax.nn.softmax(h_ref @ w2 + b2, axis=-1)
    assert s.shape == (N, K)
    assert jnp.allclose(s, s_ref, atol=1e-2, rtol=1e-2), "mismatch vs reference"
    assert jnp.allclose(jnp.sum(s, axis=-1), 1.0, atol=1e-3), "rows not normalized"

    # Also exercise the hard-assignment path (one-hot rows sum to exactly 1).
    s_h = jax.block_until_ready(
        comm_det_gnn(x, adj, params, hard_assignment=True,
                     adj_prepped=adj_prepped))
    assert s_h.shape == (N, K)
    assert jnp.allclose(jnp.sum(s_h, axis=-1), 1.0)

    print("KERNEL_OK")
</pallas_src>

<mosaic_0001>
module attributes {stable_mosaic.version = 11 : i64} {
  func.func @_commdet_kernel(%arg0: i32, %arg1: i32, %arg2: memref<32x128xi8, #tpu.memory_space<vmem>>, %arg3: memref<128x128xbf16, #tpu.memory_space<vmem>>, %arg4: memref<1x128xf32, #tpu.memory_space<vmem>>, %arg5: memref<128x128xbf16, #tpu.memory_space<vmem>>, %arg6: memref<1x128xf32, #tpu.memory_space<vmem>>, %arg7: memref<128x128xbf16, #tpu.memory_space<vmem>>, %arg8: memref<1x128xf32, #tpu.memory_space<vmem>>, %arg9: memref<32x128xf32, #tpu.memory_space<vmem>>, %arg10: memref<32x128xf32, #tpu.memory_space<vmem>>) attributes {dimension_semantics = [#tpu.dimension_semantics<parallel>, #tpu.dimension_semantics<arbitrary>], iteration_bounds = array<i64: 1, 1>, scalar_prefetch = 0 : i64, scratch_operands = 1 : i64, tpu.core_type = #tpu.core_type<tc>, window_params = [{transform_indices = @transform_0, window_bounds = array<i64: 32, 128>}, {transform_indices = @transform_1, window_bounds = array<i64: 128, 128>}, {pipeline_mode = #tpu.pipeline_mode<synchronous>, transform_indices = @transform_2, window_bounds = array<i64: 1, 128>}, {pipeline_mode = #tpu.pipeline_mode<synchronous>, transform_indices = @transform_3, window_bounds = array<i64: 128, 128>}, {pipeline_mode = #tpu.pipeline_mode<synchronous>, transform_indices = @transform_4, window_bounds = array<i64: 1, 128>}, {pipeline_mode = #tpu.pipeline_mode<synchronous>, transform_indices = @transform_5, window_bounds = array<i64: 128, 128>}, {pipeline_mode = #tpu.pipeline_mode<synchronous>, transform_indices = @transform_6, window_bounds = array<i64: 1, 128>}, {transform_indices = @transform_7, window_bounds = array<i64: 32, 128>}]} {
    %c0_i32 = arith.constant 0 : i32
    %0 = arith.cmpi eq, %arg1, %c0_i32 : i32
    %1 = arith.extui %0 : i1 to i32
    %c0_i32_0 = arith.constant 0 : i32
    %2 = arith.cmpi ne, %1, %c0_i32_0 : i32
    scf.if %2 {
      %cst_10 = arith.constant 0.000000e+00 : f32
      %13 = vector.broadcast %cst_10 : f32 to vector<32x128xf32>
      %c0_11 = arith.constant 0 : index
      %c0_12 = arith.constant 0 : index
      %14 = vector.load %arg10[%c0_11, %c0_12] : memref<32x128xf32, #tpu.memory_space<vmem>>, vector<32x128xf32>
      tpu.vector_store %arg10[%c0_11, %c0_12], %13 {strides = array<i32>} : memref<32x128xf32, #tpu.memory_space<vmem>>, vector<32x128xf32>,
    } else {
    }
    %c0 = arith.constant 0 : index
    %c0_1 = arith.constant 0 : index
    %3 = vector.load %arg2[%c0, %c0_1] : memref<32x128xi8, #tpu.memory_space<vmem>>, vector<32x128xi8>
    %4 = arith.sitofp %3 : vector<32x128xi8> to vector<32x128xbf16>
    %c0_2 = arith.constant 0 : index
    %c0_3 = arith.constant 0 : index
    %5 = vector.load %arg10[%c0_2, %c0_3] : memref<32x128xf32, #tpu.memory_space<vmem>>, vector<32x128xf32>
    %c0_4 = arith.constant 0 : index
    %c0_5 = arith.constant 0 : index
    %6 = vector.load %arg3[%c0_4, %c0_5] : memref<128x128xbf16, #tpu.memory_space<vmem>>, vector<128x128xbf16>
    %cst = arith.constant dense<0.000000e+00> : vector<32x128xf32>
    %7 = tpu.matmul %4, %6, %cst {dimension_numbers = #tpu.dot_dimension_numbers<[1], [0], [0], [1], [0, 0, 1, 1], [], []>} : vector<32x128xbf16>, vector<128x128xbf16>, vector<32x128xf32> -> vector<32x128xf32>
    %8 = arith.addf %5, %7 : vector<32x128xf32>
    %c0_6 = arith.constant 0 : index
    %c0_7 = arith.constant 0 : index
    %9 = vector.load %arg10[%c0_6, %c0_7] : memref<32x128xf32, #tpu.memory_space<vmem>>, vector<32x128xf32>
    tpu.vector_store %arg10[%c0_6, %c0_7], %8 {strides = array<i32>} : memref<32x128xf32, #tpu.memory_space<vmem>>, vector<32x128xf32>,
    %c0_i32_8 = arith.constant 0 : i32
    %10 = arith.cmpi eq, %arg1, %c0_i32_8 : i32
    %11 = arith.extui %10 : i1 to i32
    %c0_i32_9 = arith.constant 0 : i32
    %12 = arith.cmpi ne, %11, %c0_i32_9 : i32
    scf.if %12 {
      %c0_10 = arith.constant 0 : index
      %c0_11 = arith.constant 0 : index
      %13 = vector.load %arg10[%c0_10, %c0_11] : memref<32x128xf32, #tpu.memory_space<vmem>>, vector<32x128xf32>
      %c0_12 = arith.constant 0 : index
      %c0_13 = arith.constant 0 : index
      %14 = vector.load %arg4[%c0_12, %c0_13] : memref<1x128xf32, #tpu.memory_space<vmem>>, vector<1x128xf32>
      %15 = vector.broadcast %14 : vector<1x128xf32> to vector<32x128xf32>
      %16 = arith.addf %13, %15 : vector<32x128xf32>
      %cst_14 = arith.constant 0.000000e+00 : f32
      %17 = vector.broadcast %cst_14 : f32 to vector<32x128xf32>
      %18 = arith.maximumf %16, %17 : vector<32x128xf32>
      %19 = arith.truncf %18 : vector<32x128xf32> to vector<32x128xbf16>
      %c0_15 = arith.constant 0 : index
      %c0_16 = arith.constant 0 : index
      %20 = vector.load %arg5[%c0_15, %c0_16] : memref<128x128xbf16, #tpu.memory_space<vmem>>, vector<128x128xbf16>
      %cst_17 = arith.constant dense<0.000000e+00> : vector<32x128xf32>
      %21 = tpu.matmul %19, %20, %cst_17 {dimension_numbers = #tpu.dot_dimension_numbers<[1], [0], [0], [1], [0, 0, 1, 1], [], []>} : vector<32x128xbf16>, vector<128x128xbf16>, vector<32x128xf32> -> vector<32x128xf32>
      %c0_18 = arith.constant 0 : index
      %c0_19 = arith.constant 0 : index
      %22 = vector.load %arg6[%c0_18, %c0_19] : memref<1x128xf32, #tpu.memory_space<vmem>>, vector<1x128xf32>
      %23 = vector.broadcast %22 : vector<1x128xf32> to vector<32x128xf32>
      %24 = arith.addf %21, %23 : vector<32x128xf32>
      %cst_20 = arith.constant 0.000000e+00 : f32
      %25 = vector.broadcast %cst_20 : f32 to vector<32x128xf32>
      %26 = arith.maximumf %24, %25 : vector<32x128xf32>
      %27 = arith.truncf %26 : vector<32x128xf32> to vector<32x128xbf16>
      %c0_21 = arith.constant 0 : index
      %c0_22 = arith.constant 0 : index
      %28 = vector.load %arg7[%c0_21, %c0_22] : memref<128x128xbf16, #tpu.memory_space<vmem>>, vector<128x128xbf16>
      %cst_23 = arith.constant dense<0.000000e+00> : vector<32x128xf32>
      %29 = tpu.matmul %27, %28, %cst_23 {dimension_numbers = #tpu.dot_dimension_numbers<[1], [0], [0], [1], [0, 0, 1, 1], [], []>} : vector<32x128xbf16>, vector<128x128xbf16>, vector<32x128xf32> -> vector<32x128xf32>
      %c0_24 = arith.constant 0 : index
      %c0_25 = arith.constant 0 : index
      %30 = vector.load %arg8[%c0_24, %c0_25] : memref<1x128xf32, #tpu.memory_space<vmem>>, vector<1x128xf32>
      %31 = vector.broadcast %30 : vector<1x128xf32> to vector<32x128xf32>
      %32 = arith.addf %29, %31 : vector<32x128xf32>
      %cst_26 = arith.constant dense<0xFF800000> : vector<32xf32>
      %33 = vector.multi_reduction <maximumf>, %32, %cst_26 [1] : vector<32x128xf32> to vector<32xf32>
      %34 = vector.shape_cast %33 : vector<32xf32> to vector<32x1xf32>
      %35 = vector.broadcast %34 : vector<32x1xf32> to vector<32x128xf32>
      %36 = arith.subf %32, %35 : vector<32x128xf32>
      %37 = math.exp %36 : vector<32x128xf32>
      %cst_27 = arith.constant dense<0.000000e+00> : vector<32xf32>
      %38 = vector.multi_reduction <add>, %37, %cst_27 [1] : vector<32x128xf32> to vector<32xf32>
      %39 = vector.shape_cast %38 : vector<32xf32> to vector<32x1xf32>
      %40 = vector.broadcast %39 : vector<32x1xf32> to vector<32x128xf32>
      %41 = arith.divf %37, %40 : vector<32x128xf32>
      %c0_28 = arith.constant 0 : index
      %c0_29 = arith.constant 0 : index
      %42 = vector.load %arg9[%c0_28, %c0_29] : memref<32x128xf32, #tpu.memory_space<vmem>>, vector<32x128xf32>
      tpu.vector_store %arg9[%c0_28, %c0_29], %41 {strides = array<i32>} : memref<32x128xf32, #tpu.memory_space<vmem>>, vector<32x128xf32>,
    } else {
    }
    return
  }
  func.func @transform_0(%arg0: i32, %arg1: i32) -> (i32, i32) {
    %c0_i32 = arith.constant 0 : i32
    return %arg0, %arg1 : i32, i32
  }
  func.func @transform_1(%arg0: i32, %arg1: i32) -> (i32, i32) {
    %c0_i32 = arith.constant 0 : i32
    %c0_i32_0 = arith.constant 0 : i32
    return %arg1, %c0_i32 : i32, i32
  }
  func.func @transform_2(%arg0: i32, %arg1: i32) -> (i32, i32) {
    %c0_i32 = arith.constant 0 : i32
    %c0_i32_0 = arith.constant 0 : i32
    %c0_i32_1 = arith.constant 0 : i32
    return %c0_i32, %c0_i32_0 : i32, i32
  }
  func.func @transform_3(%arg0: i32, %arg1: i32) -> (i32, i32) {
    %c0_i32 = arith.constant 0 : i32
    %c0_i32_0 = arith.constant 0 : i32
    %c0_i32_1 = arith.constant 0 : i32
    return %c0_i32, %c0_i32_0 : i32, i32
  }
  func.func @transform_4(%arg0: i32, %arg1: i32) -> (i32, i32) {
    %c0_i32 = arith.constant 0 : i32
    %c0_i32_0 = arith.constant 0 : i32
    %c0_i32_1 = arith.constant 0 : i32
    return %c0_i32, %c0_i32_0 : i32, i32
  }
  func.func @transform_5(%arg0: i32, %arg1: i32) -> (i32, i32) {
    %c0_i32 = arith.constant 0 : i32
    %c0_i32_0 = arith.constant 0 : i32
    %c0_i32_1 = arith.constant 0 : i32
    return %c0_i32, %c0_i32_0 : i32, i32
  }
  func.func @transform_6(%arg0: i32, %arg1: i32) -> (i32, i32) {
    %c0_i32 = arith.constant 0 : i32
    %c0_i32_0 = arith.constant 0 : i32
    %c0_i32_1 = arith.constant 0 : i32
    return %c0_i32, %c0_i32_0 : i32, i32
  }
  func.func @transform_7(%arg0: i32, %arg1: i32) -> (i32, i32) {
    %c0_i32 = arith.constant 0 : i32
    %c0_i32_0 = arith.constant 0 : i32
    return %arg0, %c0_i32 : i32, i32
  }
}

</mosaic_0001>

<bundles_post_ra>
// kernel: tpu_custom_call.1
= control target key start
LH: loop header
LB: loop body
LE: loop exit
PB: predicated region body
PF: predicated region fallthrough
CT: control target
= control target key end

     0   :  { %12 = vsyncpa [#allocation4], 0  ;;  %s902_s0 = inlined_call_operand.hbm [shape: s8[32,128], index: 0, kind: input, shape index: {}]   ;;  %s903_s1 = inlined_call_operand.hbm [shape: bf16[128,128], index: 1, kind: input, shape index: {}]   ;;  %s904_s2 = inlined_call_operand.vmem [shape: f32[1,128], index: 2, kind: input, shape index: {}]   ;;  %s905_s3 = inlined_call_operand.hbm [shape: bf16[128,128], index: 3, kind: input, shape index: {}]   ;;  %s906_s4 = inlined_call_operand.vmem [shape: f32[1,128], index: 4, kind: input, shape index: {}]   ;;  %s907_s5 = inlined_call_operand.hbm [shape: bf16[128,128], index: 5, kind: input, shape index: {}]   ;;  %s908_s6 = inlined_call_operand.vmem [shape: f32[1,128], index: 6, kind: input, shape index: {}]   ;;  %s909_s7 = inlined_call_operand.hbm [shape: f32[32,128], index: 7, kind: output, shape index: {}]  }
   0x1   :  { %13 = vsyncpa [#allocation7], 0 }
   0x2   :  { %14 = vsyncpa [#allocation10], 0 }
   0x3   :  { %15 = vsyncpa [#allocation5], 0  ;;  %s820_s24 = smov [#allocation6]  }
   0x4   :  { %s31_s25 = sshll.u32 %s820_s24, 4  ;;  %s32_s25 = int_to_ptr.vmem [resolvable:$true] %s31_s25 }
   0x5   :  { %s720_s26 = scalar_lea.vmem %s32_s25, 1024  ;;  %p725_p1 = scmp.lt.s32.totalorder %s32_s25, %s32_s25 }
   0x6   :  { %p721_p0 = scmp.ne.s32.totalorder %s32_s25, %s720_s26  ;;  %p726_p2 = scmp.lt.s32.totalorder %s720_s26, %s720_s26 }
   0x8   :  { %p727_p3 = por %p726_p2, %p725_p1 }
   0xa   :  { %p728_p4 = pnand %p727_p3, %p721_p0 }
   0xc   :  { %731 = shalt.err (!%p728_p4)
}
   0xd   :  { %s821_s27 = smov 64   ;;  %s822_s28 = smov 4  }
   0xe   :  { %37 = dma.hbm_to_vmem [thread:$0]  %s903_s1, 1024, %s32_s25, [#allocation7], %s821_s27, %s821_s27, %s822_s28  }
   0xf   :  { %s823_s8 = smov [#allocation3]   ;;  %s824_s10 = smov [#allocation8]  }
  0x10   :  { %s22_s9 = sshll.u32 %s823_s8, 4  ;;  %s45_s11 = sshll.u32 %s824_s10, 4  ;;  %s23_s9 = int_to_ptr.vmem [resolvable:$true] %s22_s9  ;;  %s46_s11 = int_to_ptr.vmem [resolvable:$true] %s45_s11 }
  0x11   :  { %s740_s12 = scalar_lea.vmem %s23_s9, 128  ;;  %p745_p6 = scmp.lt.s32.totalorder %s23_s9, %s23_s9 }
  0x12   :  { %p741_p5 = scmp.ne.s32.totalorder %s23_s9, %s740_s12  ;;  %p746_p7 = scmp.lt.s32.totalorder %s740_s12, %s740_s12 }
  0x14   :  { %p747_p8 = por %p746_p7, %p745_p6 }
  0x16   :  { %p748_p9 = pnand %p747_p8, %p741_p5 }
  0x18   :  { %751 = shalt.err (!%p748_p9)
}
  0x19   :  { %25 = dma.hbm_to_vmem [thread:$0]  %s902_s0, 128, %s23_s9, [#allocation4]  }
  0x1a   :  { %s760_s15 = scalar_lea.vmem %s46_s11, 1024  ;;  %p765_p11 = scmp.lt.s32.totalorder %s46_s11, %s46_s11 }
  0x1b   :  { %p761_p10 = scmp.ne.s32.totalorder %s46_s11, %s760_s15  ;;  %p766_p12 = scmp.lt.s32.totalorder %s760_s15, %s760_s15 }
  0x1d   :  { %p767_p13 = por %p766_p12, %p765_p11 }
  0x1f   :  { %p768_p0 = pnand %p767_p13, %p761_p10 }
  0x21   :  { %771 = shalt.err (!%p768_p0)
}
  0x22   :  { %51 = dma.hbm_to_vmem [thread:$0]  %s905_s3, 1024, %s46_s11, [#allocation7], %s821_s27, %s821_s27, %s822_s28  }
  0x23   :  { %s825_s17 = smov [#allocation9]  }
  0x24   :  { %s59_s18 = sshll.u32 %s825_s17, 4  ;;  %s60_s18 = int_to_ptr.vmem [resolvable:$true] %s59_s18 }
  0x25   :  { %s780_s19 = scalar_lea.vmem %s60_s18, 1024  ;;  %p785_p2 = scmp.lt.s32.totalorder %s60_s18, %s60_s18 }
  0x26   :  { %p781_p1 = scmp.ne.s32.totalorder %s60_s18, %s780_s19  ;;  %p786_p3 = scmp.lt.s32.totalorder %s780_s19, %s780_s19 }
  0x28   :  { %p787_p4 = por %p786_p3, %p785_p2 }
  0x2a   :  { %p788_p5 = pnand %p787_p4, %p781_p1 }
  0x2c   :  { %791 = shalt.err (!%p788_p5)
}
  0x2d   :  { %65 = dma.hbm_to_vmem [thread:$0]  %s907_s5, 1024, %s60_s18, [#allocation10], %s821_s27, %s821_s27, %s822_s28  }
  0x2e   :  { %812 = dma.done.wait [#allocation4], 128  }
  0x2f   :  { %813 = vsyncadd [#allocation4], 4294967168 }
  0x30   :  { %814 = dma.done.wait [#allocation7], 2048  }
  0x31   :  { %815 = vsyncadd [#allocation7], 4294965248 }
  0x32   :  { %816 = dma.done.wait [#allocation10], 1024  }
  0x33   :  { %817 = vsyncadd [#allocation10], 4294966272  ;;  %v672_v0 = vld [vmem:[#allocation6 + $0x38] sm:$0xff]   ;;  %v673_v1 = vld [vmem:[#allocation6 + $0x30] sm:$0xff]  }
  0x34   :  { %603 = vmatprep.subr.bf16.mxu0 %v672_v0  ;;  %v674_v2 = vld [vmem:[#allocation6 + $0x28] sm:$0xff]   ;;  %v675_v3 = vld [vmem:[#allocation6 + $0x20] sm:$0xff]   ;;  %v89_v4 = vld [vmem:[#allocation3] sm:$0xff] }
  0x35   :  { %604 = vmatpush3.bf16.msra.mxu0 %v672_v0  ;;  %v90_v5 = vunpack.c.l.s8.bf16 %v89_v4  ;;  %v680_v6 = vld [vmem:[#allocation8 + $0x38] sm:$0xff]   ;;  %v681_v7 = vld [vmem:[#allocation8 + $0x30] sm:$0xff]   ;;  %v682_v9 = vld [vmem:[#allocation8 + $0x28] sm:$0xff]   ;;  %v91_v15 = vunpack.c.h.s8.bf16 %v89_v4 }
  0x36   :  { %605 = vmatprep.subr.bf16.mxu0 %v673_v1  ;;  %v676_v8 = vld [vmem:[#allocation6 + $0x18] sm:$0xff]   ;;  %623 = vmatprep.subr.bf16.mxu1 %v680_v6  ;;  %v677_v10 = vld [vmem:[#allocation6 + $0x10] sm:$0xff]   ;;  %v683_v11 = vld [vmem:[#allocation8 + $0x20] sm:$0xff]  }
  0x37   :  { %619 = vmatprep.mubr.bf16.mxu0 %v90_v5  ;;  %624 = vmatpush3.bf16.msra.mxu1 %v680_v6  ;;  %v678_v12 = vld [vmem:[#allocation6 + $0x8] sm:$0xff]   ;;  %v684_v13 = vld [vmem:[#allocation8 + $0x18] sm:$0xff]   ;;  %v679_v14 = vld [vmem:[#allocation6] sm:$0xff]  }
  0x38   :  { %625 = vmatprep.subr.bf16.mxu1 %v681_v7  ;;  %v685_v16 = vld [vmem:[#allocation8 + $0x10] sm:$0xff]   ;;  %v686_v17 = vld [vmem:[#allocation8 + $0x8] sm:$0xff]   ;;  %v687_v18 = vld [vmem:[#allocation8] sm:$0xff]  }
  0x39   :  { %606 = vmatpush3.bf16.msra.mxu0 %v673_v1  ;;  %v688_v19 = vld [vmem:[#allocation9 + $0x38] sm:$0xff]   ;;  %v689_v20 = vld [vmem:[#allocation9 + $0x30] sm:$0xff]   ;;  %v690_v21 = vld [vmem:[#allocation9 + $0x28] sm:$0xff]  }
  0x3a   :  { %607 = vmatprep.subr.bf16.mxu0 %v674_v2  ;;  %v691_v22 = vld [vmem:[#allocation9 + $0x20] sm:$0xff]   ;;  %v692_v23 = vld [vmem:[#allocation9 + $0x18] sm:$0xff]   ;;  %v693_v39 = vld [vmem:[#allocation9 + $0x10] sm:$0xff]  }
  0x3b   :  { %626 = vmatpush3.bf16.msra.mxu1 %v681_v7  ;;  %v554_v26 = vld [vmem:[%s904_s2] ss:$0 sm:$0xff]  ;;  %v694_v40 = vld [vmem:[#allocation9 + $0x8] sm:$0xff]   ;;  %v695_v41 = vld [vmem:[#allocation9] sm:$0xff]  }
  0x3c   :  { %627 = vmatprep.subr.bf16.mxu1 %v682_v9  ;;  %v555_v44 = vld [vmem:[%s906_s4] ss:$0 sm:$0xff]  ;;  %s826_s4 = smov [#allocation11]  }
  0x3d   :  { %608 = vmatpush3.bf16.msra.mxu0 %v674_v2  ;;  %v564_v57 = vld [vmem:[%s908_s6] ss:$0 sm:$0xff]  ;;  %s532_s6 = sshll.u32 %s826_s4, 4  ;;  %s533_s6 = int_to_ptr.vmem [resolvable:$true] %s532_s6 }
  0x3e   :  { %609 = vmatprep.subr.bf16.mxu0 %v675_v3  ;;  %s792_s24 = scalar_lea.vmem %s533_s6, 512  ;;  %p797_p7 = scmp.lt.s32.totalorder %s533_s6, %s533_s6 }
  0x3f   :  { %628 = vmatpush3.bf16.msra.mxu1 %v682_v9  ;;  %p793_p6 = scmp.ne.s32.totalorder %s533_s6, %s792_s24  ;;  %p798_p8 = scmp.lt.s32.totalorder %s792_s24, %s792_s24 }
  0x40   :  { %629 = vmatprep.subr.bf16.mxu1 %v683_v11 }
  0x41   :  { %610 = vmatpush3.bf16.msra.mxu0 %v675_v3  ;;  %p799_p9 = por %p798_p8, %p797_p7 }
  0x42   :  { %611 = vmatprep.subr.bf16.mxu0 %v676_v8 }
  0x43   :  { %630 = vmatpush3.bf16.msra.mxu1 %v683_v11  ;;  %p800_p10 = pnand %p799_p9, %p793_p6 }
  0x44   :  { %631 = vmatprep.subr.bf16.mxu1 %v684_v13 }
  0x45   :  { %612 = vmatpush3.bf16.msra.mxu0 %v676_v8 }
  0x46   :  { %613 = vmatprep.subr.bf16.mxu0 %v677_v10 }
  0x47   :  { %632 = vmatpush3.bf16.msra.mxu1 %v684_v13 }
  0x48   :  { %633 = vmatprep.subr.bf16.mxu1 %v685_v16 }
  0x49   :  { %614 = vmatpush3.bf16.msra.mxu0 %v677_v10 }
  0x4a   :  { %615 = vmatprep.subr.bf16.mxu0 %v678_v12 }
  0x4b   :  { %634 = vmatpush3.bf16.msra.mxu1 %v685_v16 }
  0x4c   :  { %635 = vmatprep.subr.bf16.mxu1 %v686_v17 }
  0x4d   :  { %616 = vmatpush3.bf16.msra.mxu0 %v678_v12 }
  0x4e   :  { %617 = vmatprep.subr.bf16.mxu0 %v679_v14 }
  0x4f   :  { %636 = vmatpush3.bf16.msra.mxu1 %v686_v17 }
  0x50   :  { %637 = vmatprep.subr.bf16.mxu1 %v687_v18 }
  0x51   :  { %618 = vmatpush3.bf16.msra.mxu0 %v679_v14 }
  0x52   :  { %643 = vmatprep.subr.bf16.mxu0 %v688_v19 }
  0x53   :  { %638 = vmatpush3.bf16.msra.mxu1 %v687_v18 }
  0x54   :  { %620 = vmatmul.mubr.bf16.vlgmr.msra.gmra.mxu0 %v91_v15 }
  0x55   :  { %644 = vmatpush3.bf16.msra.mxu0 %v688_v19 }
  0x56   :  { %645 = vmatprep.subr.bf16.mxu0 %v689_v20 }
  0x59   :  { %646 = vmatpush3.bf16.msra.mxu0 %v689_v20 }
  0x5a   :  { %647 = vmatprep.subr.bf16.mxu0 %v690_v21 }
  0x5d   :  { %648 = vmatpush3.bf16.msra.mxu0 %v690_v21 }
  0x5e   :  { %649 = vmatprep.subr.bf16.mxu0 %v691_v22 }
  0x61   :  { %650 = vmatpush3.bf16.msra.mxu0 %v691_v22 }
  0x62   :  { %651 = vmatprep.subr.bf16.mxu0 %v692_v23 }
  0x65   :  { %652 = vmatpush3.bf16.msra.mxu0 %v692_v23 }
  0x66   :  { %653 = vmatprep.subr.bf16.mxu0 %v693_v39 }
  0x69   :  { %654 = vmatpush3.bf16.msra.mxu0 %v693_v39 }
  0x6a   :  { %655 = vmatprep.subr.bf16.mxu0 %v694_v40 }
  0x6d   :  { %656 = vmatpush3.bf16.msra.mxu0 %v694_v40 }
  0x6e   :  { %657 = vmatprep.subr.bf16.mxu0 %v695_v41 }
  0x71   :  { %658 = vmatpush3.bf16.msra.mxu0 %v695_v41 }
 0x114   :  { %v621_v24 = vpop.f32.mrf.mxu0 }
 0x115   :  { %v233_v30 = vadd.f32 %v621_v24, %v554_v26 }
 0x116   :  { %v194_v25 = vpop.f32.mrf.mxu0 }
 0x117   :  { %v231_v28 = vadd.f32 %v554_v26, %v194_v25  ;;  %v237_v36 = vmax.f32 %v233_v30, 0.0 }
 0x118   :  { %v622_v27 = vpop.f32.mrf.mxu0 }
 0x119   :  { %v234_v29 = vadd.f32 %v622_v27, %v554_v26  ;;  %v235_v34 = vmax.f32 %v231_v28, 0.0 }
 0x11a   :  { %v197_v31 = vpop.f32.mrf.mxu0 }
 0x11b   :  { %v232_v32 = vadd.f32 %v554_v26, %v197_v31  ;;  %v238_v33 = vmax.f32 %v234_v29, 0.0 }
 0x11d   :  { %v236_v35 = vmax.f32 %v232_v32, 0.0  ;;  %v240_v38 = vpack.c.bf16 %v238_v33, %v237_v36 }
 0x11f   :  { %v239_v37 = vpack.c.bf16 %v236_v35, %v235_v34 }
 0x121   :  { %639 = vmatprep.mubr.bf16.mxu1 %v239_v37 }
 0x122   :  { %640 = vmatmul.mubr.bf16.vlgmr.msra.gmra.mxu1 %v240_v38 }
 0x1e2   :  { %v641_v42 = vpop.f32.mrf.mxu1 }
 0x1e3   :  { %v355_v48 = vadd.f32 %v641_v42, %v555_v44 }
 0x1e4   :  { %v346_v43 = vpop.f32.mrf.mxu1 }
 0x1e5   :  { %v347_v46 = vadd.f32 %v555_v44, %v346_v43  ;;  %v363_v54 = vmax.f32 %v355_v48, 0.0 }
 0x1e6   :  { %v642_v45 = vpop.f32.mrf.mxu1 }
 0x1e7   :  { %v358_v47 = vadd.f32 %v642_v45, %v555_v44  ;;  %v361_v52 = vmax.f32 %v347_v46, 0.0 }
 0x1e8   :  { %v349_v49 = vpop.f32.mrf.mxu1 }
 0x1e9   :  { %v350_v50 = vadd.f32 %v555_v44, %v349_v49  ;;  %v364_v51 = vmax.f32 %v358_v47, 0.0 }
 0x1eb   :  { %v362_v53 = vmax.f32 %v350_v50, 0.0  ;;  %v366_v56 = vpack.c.bf16 %v364_v51, %v363_v54 }
 0x1ed   :  { %v365_v55 = vpack.c.bf16 %v362_v53, %v361_v52 }
 0x1ef   :  { %659 = vmatprep.mubr.bf16.mxu0 %v365_v55 }
 0x1f0   :  { %660 = vmatmul.mubr.bf16.vlgmr.msra.gmra.mxu0 %v366_v56 }
 0x2b0   :  { %v661_v58 = vpop.f32.mrf.mxu0 }
 0x2b1   :  { %v481_v59 = vadd.f32 %v661_v58, %v564_v57 }
 0x2b2   :  { %v472_v60 = vpop.f32.mrf.mxu0 }
 0x2b3   :  { %v473_v61 = vadd.f32 %v564_v57, %v472_v60  ;;  %491 = vmax.xlane.f32.xlu1 %v481_v59 }
 0x2b4   :  { %v662_v62 = vpop.f32.mrf.mxu0 }
 0x2b5   :  { %v484_v63 = vadd.f32 %v662_v62, %v564_v57  ;;  %487 = vmax.xlane.f32.xlu0 %v473_v61 }
 0x2b6   :  { %v475_v0 = vpop.f32.mrf.mxu0 }
 0x2b7   :  { %v476_v1 = vadd.f32 %v564_v57, %v475_v0  ;;  %493 = vmax.xlane.f32.xlu1 %v484_v63 }
 0x2b9   :  { %489 = vmax.xlane.f32.xlu0 %v476_v1 }
 0x33c   :  { %v492_v2 = vpop.xlane.xlu1 %491 }
 0x33d   :  { %v497_v3 = vsub.f32 %v481_v59, %v492_v2 }
 0x33e   :  { %v488_v4 = vpop.xlane.xlu0 %487 }
 0x33f   :  { %v495_v5 = vsub.f32 %v473_v61, %v488_v4  ;;  %v503_v8 = vmul.f32 1.442695, %v497_v3 }
 0x340   :  { %v494_v6 = vpop.xlane.xlu1 %493 }
 0x341   :  { %v499_v7 = vmul.f32 1.442695, %v495_v5  ;;  %v498_v10 = vsub.f32 %v484_v63, %v494_v6 }
 0x342   :  { %v490_v9 = vpop.xlane.xlu0 %489 }
 0x343   :  { %696 = vpow2.f32 %v499_v7  ;;  %v496_v11 = vsub.f32 %v476_v1, %v490_v9  ;;  %v505_v13 = vmul.f32 1.442695, %v498_v10 }
 0x344   :  { %698 = vpow2.f32 %v503_v8 }
 0x345   :  { %v501_v12 = vmul.f32 1.442695, %v496_v11 }
 0x347   :  { %700 = vpow2.f32 %v501_v12 }
 0x348   :  { %702 = vpow2.f32 %v505_v13 }
 0x350   :  { %v697_v14 = vpop.eup %696 }
 0x351   :  { %507 = vadd.xlane.f32.xlu0 %v697_v14  ;;  %v699_v15 = vpop.eup %698 }
 0x354   :  { %v701_v16 = vpop.eup %700 }
 0x355   :  { %511 = vadd.xlane.f32.xlu0 %v699_v15  ;;  %509 = vadd.xlane.f32.xlu1 %v701_v16  ;;  %v703_v17 = vpop.eup %702 }
 0x359   :  { %513 = vadd.xlane.f32.xlu1 %v703_v17 }
 0x3da   :  { %v508_v18 = vpop.xlane.xlu0 %507 }
 0x3db   :  { %704 = vrcp.f32 %v508_v18 }
 0x3de   :  { %v510_v19 = vpop.xlane.xlu1 %509  ;;  %v512_v20 = vpop.xlane.xlu0 %511 }
 0x3df   :  { %706 = vrcp.f32 %v510_v19 }
 0x3e0   :  { %708 = vrcp.f32 %v512_v20 }
 0x3e2   :  { %v514_v21 = vpop.xlane.xlu1 %513 }
 0x3e3   :  { %710 = vrcp.f32 %v514_v21 }
 0x3e8   :  { %v705_v22 = vpop.eup %704 }
 0x3e9   :  { %v516_v23 = vmul.f32 %v705_v22, %v697_v14 }
 0x3eb   :  { %523 = vst [vmem:[#allocation11] sm:$0xff] %v516_v23 }
 0x3ec   :  { %v707_v24 = vpop.eup %706 }
 0x3ed   :  { %v709_v25 = vpop.eup %708  ;;  %v518_v26 = vmul.f32 %v707_v24, %v701_v16 }
 0x3ee   :  { %v520_v27 = vmul.f32 %v709_v25, %v699_v15 }
 0x3ef   :  { %524 = vst [vmem:[#allocation11 + $0x8] sm:$0xff] %v518_v26 }
 0x3f0   :  { %v711_v28 = vpop.eup %710  ;;  %525 = vst [vmem:[#allocation11 + $0x10] sm:$0xff] %v520_v27 }
 0x3f1   :  { %v522_v29 = vmul.f32 %v711_v28, %v703_v17 }
 0x3f3   :  { %526 = vst [vmem:[#allocation11 + $0x18] sm:$0xff] %v522_v29 }
 0x3f4   :  { %803 = shalt.err (!%p800_p10)
}
 0x3f5   :  { %s827_s25 = smov 128   ;;  %s828_s26 = smov 8  }
 0x3f6   :  { %538 = dma.vmem_to_hbm [thread:$0]  %s533_s6, 512, %s909_s7, [#allocation5], %s827_s25, %s827_s25, %s828_s26  }
 0x3f7   :  { %818 = dma.done.wait [#allocation5], 512  }
 0x3f8   :  { %819 = vsyncadd [#allocation5], 4294966784 }
 0x3f9   :  { %542 = vsyncpa [#allocation4], 1 }
 0x3fa   :  { %543 = vsyncpa [#allocation7], 1 }
 0x3fb   :  { %544 = vsyncpa [#allocation10], 1 }
 0x3fc   :  { %545 = vsyncpa [#allocation5], 1 }

</bundles_post_ra>
